<compile_context>
chip_gen: v5e
topology: v5e:2x2
jax: 0.10.0
libtpu: 0.0.40
codegen_flags: <defaults>
</compile_context>

<pallas_src>
import functools

import numpy as np
import jax
import jax.numpy as jnp
from jax.experimental import pallas as pl
from jax.experimental.pallas import tpu as pltpu

d_model = 256
edge_num = 78
E_PAD = 128            # edge_num padded to a full lane width
max_atoms = 13
k = 20
msp_len = 800
padding_idx = 799
NEG_FILL = -1.0e9

# Static edge -> j atom-index table.  j > i for every edge, so the reference
# condition (i >= len or j >= len) reduces to (j >= len).  Pad columns
# (>= edge_num) are sliced away in the wrapper, their value is irrelevant.
_EDGE_J = np.zeros((1, E_PAD), dtype=np.int32)
_idx = 0
for _i in range(max_atoms):
    for _j in range(_i + 1, max_atoms):
        _EDGE_J[0, _idx] = _j
        _idx += 1


def get_pad_mask0(batch_size, vertex_lengths):
    # Mirrors the PyTorch get_pad_mask0 (used only by the pure-JAX reference).
    mask = np.zeros((batch_size, edge_num, 4), dtype=np.int32)
    for b in range(batch_size):
        length = int(vertex_lengths[b])
        idx = 0
        for i in range(max_atoms):
            for j in range(i + 1, max_atoms):
                if i >= length or j >= length:
                    mask[b, idx] = np.array([0, 1, 1, 1], dtype=np.int32)
                idx += 1
    return mask


def classify_kernel(emix_ref, w1_ref, bias_ref, lens_ref, ej_ref, out_ref, *,
                    b_tile):
    # Single MXU matmul: rows are class-major (row = c*b_tile + b), so every
    # per-class slab below is a static, sublane-aligned (b_tile, E_PAD) slice.
    h = jnp.dot(emix_ref[0], w1_ref[...],
                preferred_element_type=jnp.float32)          # (4*b_tile, E_PAD)

    lens = lens_ref[...]                                     # (b_tile, 1) int32
    pad_edge = ej_ref[...] >= lens                           # (b_tile, E_PAD)
    bias = bias_ref[...]                                     # (4, E_PAD)

    # Folded ll2 bias (w2sum[c]*b1 + b2[c]) added BEFORE masking, matching the
    # reference (bias then masked_fill).  Pad-mask pattern is [0, 1, 1, 1].
    l0 = h[0 * b_tile:1 * b_tile, :] + bias[0:1, :]
    l1 = jnp.where(pad_edge, NEG_FILL, h[1 * b_tile:2 * b_tile, :] + bias[1:2, :])
    l2 = jnp.where(pad_edge, NEG_FILL, h[2 * b_tile:3 * b_tile, :] + bias[2:3, :])
    l3 = jnp.where(pad_edge, NEG_FILL, h[3 * b_tile:4 * b_tile, :] + bias[3:4, :])

    # log_softmax over the 4 classes (class-major layout -> pure elementwise,
    # no cross-lane reductions).
    m = jnp.maximum(jnp.maximum(l0, l1), jnp.maximum(l2, l3))
    s = jnp.exp(l0 - m) + jnp.exp(l1 - m) + jnp.exp(l2 - m) + jnp.exp(l3 - m)
    lse = m + jnp.log(s)
    out_ref[0] = l0 - lse
    out_ref[1] = l1 - lse
    out_ref[2] = l2 - lse
    out_ref[3] = l3 - lse


def prepare_params(params):
    """Hoisted, call-once preprocessing of the module parameters."""
    emb_table, w1, b1, w2, b2 = params
    w1 = jnp.asarray(w1, jnp.float32)
    b1 = jnp.asarray(b1, jnp.float32)
    w2 = jnp.asarray(w2, jnp.float32)
    b2 = jnp.asarray(b2, jnp.float32)
    # ll1 weight, transposed and lane-padded to 128 (pad columns are zero).
    w1t_pad = jnp.zeros((d_model, E_PAD), jnp.float32).at[:, :edge_num].set(w1.T)
    # Folded per-class bias: bias_c[c, e] = (sum_kk w2[c, kk]) * b1[e] + b2[c].
    w2sum = jnp.sum(w2, axis=1)                                     # (4,)
    bias_c = jnp.zeros((4, E_PAD), jnp.float32).at[:, :edge_num].set(
        w2sum[:, None] * b1[None, :] + b2[:, None])
    ej = jnp.asarray(_EDGE_J)
    return jnp.asarray(emb_table, jnp.float32), w1t_pad, bias_c, w2, ej


def classify0_forward(src, vertex_lengths, prepared, b_tile=64):
    """src: (B, k) int32 token ids; vertex_lengths: (B,) per-example atom counts."""
    emb_table, w1t_pad, bias_c, w2, ej = prepared
    B = src.shape[0]
    b_pad = ((B + b_tile - 1) // b_tile) * b_tile
    nt = b_pad // b_tile

    lens = jnp.asarray(vertex_lengths, jnp.int32).reshape(B, 1)
    if b_pad != B:
        src = jnp.concatenate(
            [src, jnp.full((b_pad - B, k), padding_idx, src.dtype)], axis=0)
        lens = jnp.concatenate(
            [lens, jnp.full((b_pad - B, 1), max_atoms, jnp.int32)], axis=0)

    # Fold ll2 into the embedding stream: emix[b, c, :] = sum_kk w2[c,kk]*emb[b,kk,:].
    gathered = jnp.take(emb_table, src, axis=0)                     # (b_pad, k, d_model)
    emix = jnp.einsum('ck,bkd->bcd', w2, gathered)                  # (b_pad, 4, d_model)
    # Per-tile, class-major rows (row = c*b_tile + b) so the kernel's per-class
    # slabs are aligned static slices.
    emix = emix.reshape(nt, b_tile, 4, d_model).transpose(0, 2, 1, 3)
    emix = emix.reshape(nt, 4 * b_tile, d_model)

    out = pl.pallas_call(
        functools.partial(classify_kernel, b_tile=b_tile),
        out_shape=jax.ShapeDtypeStruct((4, b_pad, E_PAD), jnp.float32),
        grid=(nt,),
        in_specs=[
            pl.BlockSpec((1, 4 * b_tile, d_model), lambda i: (i, 0, 0)),  # mixed embeddings
            pl.BlockSpec((d_model, E_PAD), lambda i: (0, 0)),             # ll1 weight^T (padded)
            pl.BlockSpec((4, E_PAD), lambda i: (0, 0)),                   # folded ll2 bias
            pl.BlockSpec((b_tile, 1), lambda i: (i, 0)),                  # atom counts
            pl.BlockSpec((1, E_PAD), lambda i: (0, 0)),                   # edge -> j table
        ],
        out_specs=pl.BlockSpec((4, b_tile, E_PAD), lambda i: (0, i, 0)),  # lane-dense output
        compiler_params=pltpu.CompilerParams(
            dimension_semantics=("parallel",)),
    )(emix, w1t_pad, bias_c, lens, ej)

    # (4, B_pad, E_PAD) -> (B, edge_num, 4) to match the PyTorch module output.
    return jnp.transpose(out[:, :B, :edge_num], (1, 2, 0))


def reference_forward(src, vertex_lengths, params):
    emb_table, w1, b1, w2, b2 = params
    B = src.shape[0]
    mask = jnp.asarray(get_pad_mask0(B, vertex_lengths))
    out = jnp.take(emb_table, src, axis=0)                          # (B, k, d_model)
    out = out @ w1.T + b1                                           # (B, k, 78)
    out = jnp.transpose(out, (0, 2, 1))                             # (B, 78, k)
    out = out @ w2.T + b2                                           # (B, 78, 4)
    out = jnp.where(mask != 0, NEG_FILL, out)
    return jax.nn.log_softmax(out, axis=2)


if __name__ == "__main__":
    key = jax.random.PRNGKey(0)
    k1, k2, k3, k4, k5, k6 = jax.random.split(key, 6)

    # deterministic parameter init (shapes match the nn.Module __init__)
    emb_table = jax.random.normal(k1, (msp_len, d_model), jnp.float32)
    emb_table = emb_table.at[padding_idx].set(0.0)                  # padding_idx row
    w1 = jax.random.normal(k2, (edge_num, d_model), jnp.float32) * 0.05
    b1 = jax.random.normal(k3, (edge_num,), jnp.float32) * 0.05
    w2 = jax.random.normal(k4, (4, k), jnp.float32) * 0.1
    b2 = jax.random.normal(k5, (4,), jnp.float32) * 0.1
    params = (emb_table, w1, b1, w2, b2)

    # deterministic inputs: (B, k) token ids, per-example atom counts <= 13.
    # B=100 exercises both the batch-padding path (pad to 128) and nt=2 grid
    # steps (keeps both v7x TensorCores busy).
    B = 100
    src = jax.random.randint(k6, (B, k), 0, msp_len, dtype=jnp.int32)
    src = src.at[0, -1].set(padding_idx)                            # include a pad token
    vertex_lengths = np.array([(i % max_atoms) + 1 for i in range(B)],
                              dtype=np.int32)                       # stand-in for `vertex` lists

    prepared = prepare_params(params)
    fwd = jax.jit(functools.partial(classify0_forward, b_tile=64))

    out = fwd(src, jnp.asarray(vertex_lengths), prepared)
    out = jax.block_until_ready(out)

    ref = jax.block_until_ready(reference_forward(src, vertex_lengths, params))
    assert out.shape == (B, edge_num, 4)
    assert np.allclose(np.asarray(out), np.asarray(ref), atol=1e-4, rtol=1e-4)

    print("KERNEL_OK")
</pallas_src>

<mosaic_0001>
module attributes {stable_mosaic.version = 11 : i64} {
  func.func @classify_kernel(%arg0: i32, %arg1: memref<1x256x256xf32, #tpu.memory_space<vmem>>, %arg2: memref<256x128xf32, #tpu.memory_space<vmem>>, %arg3: memref<4x128xf32, #tpu.memory_space<vmem>>, %arg4: memref<64x1xi32, #tpu.memory_space<vmem>>, %arg5: memref<1x128xi32, #tpu.memory_space<vmem>>, %arg6: memref<4x64x128xf32, #tpu.memory_space<vmem>>) attributes {dimension_semantics = [#tpu.dimension_semantics<parallel>], iteration_bounds = array<i64: 2>, scalar_prefetch = 0 : i64, scratch_operands = 0 : i64, tpu.core_type = #tpu.core_type<tc>, window_params = [{transform_indices = @transform_0, window_bounds = array<i64: 1, 256, 256>}, {pipeline_mode = #tpu.pipeline_mode<synchronous>, transform_indices = @transform_1, window_bounds = array<i64: 256, 128>}, {pipeline_mode = #tpu.pipeline_mode<synchronous>, transform_indices = @transform_2, window_bounds = array<i64: 4, 128>}, {transform_indices = @transform_3, window_bounds = array<i64: 64, 1>}, {pipeline_mode = #tpu.pipeline_mode<synchronous>, transform_indices = @transform_4, window_bounds = array<i64: 1, 128>}, {transform_indices = @transform_5, window_bounds = array<i64: 4, 64, 128>}]} {
    %c0 = arith.constant 0 : index
    %c0_0 = arith.constant 0 : index
    %c0_1 = arith.constant 0 : index
    %0 = vector.load %arg1[%c0, %c0_0, %c0_1] : memref<1x256x256xf32, #tpu.memory_space<vmem>>, vector<1x256x256xf32>
    %1 = vector.shape_cast %0 : vector<1x256x256xf32> to vector<256x256xf32>
    %c0_2 = arith.constant 0 : index
    %c0_3 = arith.constant 0 : index
    %2 = vector.load %arg2[%c0_2, %c0_3] : memref<256x128xf32, #tpu.memory_space<vmem>>, vector<256x128xf32>
    %cst = arith.constant dense<0.000000e+00> : vector<256x128xf32>
    %3 = tpu.matmul %1, %2, %cst {dimension_numbers = #tpu.dot_dimension_numbers<[1], [0], [0], [1], [0, 0, 1, 1], [], []>} : vector<256x256xf32>, vector<256x128xf32>, vector<256x128xf32> -> vector<256x128xf32>
    %c0_4 = arith.constant 0 : index
    %c0_5 = arith.constant 0 : index
    %4 = vector.load %arg4[%c0_4, %c0_5] : memref<64x1xi32, #tpu.memory_space<vmem>>, vector<64x1xi32>
    %c0_6 = arith.constant 0 : index
    %c0_7 = arith.constant 0 : index
    %5 = vector.load %arg5[%c0_6, %c0_7] : memref<1x128xi32, #tpu.memory_space<vmem>>, vector<1x128xi32>
    %6 = vector.broadcast %5 : vector<1x128xi32> to vector<64x128xi32>
    %7 = vector.broadcast %4 : vector<64x1xi32> to vector<64x128xi32>
    %8 = arith.cmpi sge, %6, %7 : vector<64x128xi32>
    %c0_8 = arith.constant 0 : index
    %c0_9 = arith.constant 0 : index
    %9 = vector.load %arg3[%c0_8, %c0_9] : memref<4x128xf32, #tpu.memory_space<vmem>>, vector<4x128xf32>
    %10 = vector.extract_strided_slice %3 {offsets = [0, 0], sizes = [64, 128], strides = [1, 1]} : vector<256x128xf32> to vector<64x128xf32>
    %11 = vector.extract_strided_slice %9 {offsets = [0, 0], sizes = [1, 128], strides = [1, 1]} : vector<4x128xf32> to vector<1x128xf32>
    %12 = vector.broadcast %11 : vector<1x128xf32> to vector<64x128xf32>
    %13 = arith.addf %10, %12 : vector<64x128xf32>
    %14 = vector.extract_strided_slice %3 {offsets = [64, 0], sizes = [64, 128], strides = [1, 1]} : vector<256x128xf32> to vector<64x128xf32>
    %15 = vector.extract_strided_slice %9 {offsets = [1, 0], sizes = [1, 128], strides = [1, 1]} : vector<4x128xf32> to vector<1x128xf32>
    %16 = vector.broadcast %15 : vector<1x128xf32> to vector<64x128xf32>
    %17 = arith.addf %14, %16 : vector<64x128xf32>
    %cst_10 = arith.constant -1.000000e+09 : f32
    %18 = vector.broadcast %cst_10 : f32 to vector<64x128xf32>
    %19 = arith.select %8, %18, %17 : vector<64x128xi1>, vector<64x128xf32>
    %20 = vector.extract_strided_slice %3 {offsets = [128, 0], sizes = [64, 128], strides = [1, 1]} : vector<256x128xf32> to vector<64x128xf32>
    %21 = vector.extract_strided_slice %9 {offsets = [2, 0], sizes = [1, 128], strides = [1, 1]} : vector<4x128xf32> to vector<1x128xf32>
    %22 = vector.broadcast %21 : vector<1x128xf32> to vector<64x128xf32>
    %23 = arith.addf %20, %22 : vector<64x128xf32>
    %cst_11 = arith.constant -1.000000e+09 : f32
    %24 = vector.broadcast %cst_11 : f32 to vector<64x128xf32>
    %25 = arith.select %8, %24, %23 : vector<64x128xi1>, vector<64x128xf32>
    %26 = vector.extract_strided_slice %3 {offsets = [192, 0], sizes = [64, 128], strides = [1, 1]} : vector<256x128xf32> to vector<64x128xf32>
    %27 = vector.extract_strided_slice %9 {offsets = [3, 0], sizes = [1, 128], strides = [1, 1]} : vector<4x128xf32> to vector<1x128xf32>
    %28 = vector.broadcast %27 : vector<1x128xf32> to vector<64x128xf32>
    %29 = arith.addf %26, %28 : vector<64x128xf32>
    %cst_12 = arith.constant -1.000000e+09 : f32
    %30 = vector.broadcast %cst_12 : f32 to vector<64x128xf32>
    %31 = arith.select %8, %30, %29 : vector<64x128xi1>, vector<64x128xf32>
    %32 = arith.maximumf %13, %19 : vector<64x128xf32>
    %33 = arith.maximumf %25, %31 : vector<64x128xf32>
    %34 = arith.maximumf %32, %33 : vector<64x128xf32>
    %35 = arith.subf %13, %34 : vector<64x128xf32>
    %36 = math.exp %35 : vector<64x128xf32>
    %37 = arith.subf %19, %34 : vector<64x128xf32>
    %38 = math.exp %37 : vector<64x128xf32>
    %39 = arith.addf %36, %38 : vector<64x128xf32>
    %40 = arith.subf %25, %34 : vector<64x128xf32>
    %41 = math.exp %40 : vector<64x128xf32>
    %42 = arith.addf %39, %41 : vector<64x128xf32>
    %43 = arith.subf %31, %34 : vector<64x128xf32>
    %44 = math.exp %43 : vector<64x128xf32>
    %45 = arith.addf %42, %44 : vector<64x128xf32>
    %46 = math.log %45 : vector<64x128xf32>
    %47 = arith.addf %34, %46 : vector<64x128xf32>
    %48 = arith.subf %13, %47 : vector<64x128xf32>
    %c0_13 = arith.constant 0 : index
    %c0_14 = arith.constant 0 : index
    %c0_15 = arith.constant 0 : index
    %49 = vector.load %arg6[%c0_13, %c0_14, %c0_15] : memref<4x64x128xf32, #tpu.memory_space<vmem>>, vector<1x64x128xf32>
    %50 = vector.shape_cast %49 : vector<1x64x128xf32> to vector<64x128xf32>
    %51 = vector.shape_cast %48 : vector<64x128xf32> to vector<1x64x128xf32>
    tpu.vector_store %arg6[%c0_13, %c0_14, %c0_15], %51 {strides = array<i32>} : memref<4x64x128xf32, #tpu.memory_space<vmem>>, vector<1x64x128xf32>,
    %52 = arith.subf %19, %47 : vector<64x128xf32>
    %c1 = arith.constant 1 : index
    %c0_16 = arith.constant 0 : index
    %c0_17 = arith.constant 0 : index
    %53 = vector.load %arg6[%c1, %c0_16, %c0_17] : memref<4x64x128xf32, #tpu.memory_space<vmem>>, vector<1x64x128xf32>
    %54 = vector.shape_cast %53 : vector<1x64x128xf32> to vector<64x128xf32>
    %55 = vector.shape_cast %52 : vector<64x128xf32> to vector<1x64x128xf32>
    tpu.vector_store %arg6[%c1, %c0_16, %c0_17], %55 {strides = array<i32>} : memref<4x64x128xf32, #tpu.memory_space<vmem>>, vector<1x64x128xf32>,
    %56 = arith.subf %25, %47 : vector<64x128xf32>
    %c2 = arith.constant 2 : index
    %c0_18 = arith.constant 0 : index
    %c0_19 = arith.constant 0 : index
    %57 = vector.load %arg6[%c2, %c0_18, %c0_19] : memref<4x64x128xf32, #tpu.memory_space<vmem>>, vector<1x64x128xf32>
    %58 = vector.shape_cast %57 : vector<1x64x128xf32> to vector<64x128xf32>
    %59 = vector.shape_cast %56 : vector<64x128xf32> to vector<1x64x128xf32>
    tpu.vector_store %arg6[%c2, %c0_18, %c0_19], %59 {strides = array<i32>} : memref<4x64x128xf32, #tpu.memory_space<vmem>>, vector<1x64x128xf32>,
    %60 = arith.subf %31, %47 : vector<64x128xf32>
    %c3 = arith.constant 3 : index
    %c0_20 = arith.constant 0 : index
    %c0_21 = arith.constant 0 : index
    %61 = vector.load %arg6[%c3, %c0_20, %c0_21] : memref<4x64x128xf32, #tpu.memory_space<vmem>>, vector<1x64x128xf32>
    %62 = vector.shape_cast %61 : vector<1x64x128xf32> to vector<64x128xf32>
    %63 = vector.shape_cast %60 : vector<64x128xf32> to vector<1x64x128xf32>
    tpu.vector_store %arg6[%c3, %c0_20, %c0_21], %63 {strides = array<i32>} : memref<4x64x128xf32, #tpu.memory_space<vmem>>, vector<1x64x128xf32>,
    return
  }
  func.func @transform_0(%arg0: i32) -> (i32, i32, i32) {
    %c0_i32 = arith.constant 0 : i32
    %c0_i32_0 = arith.constant 0 : i32
    %c0_i32_1 = arith.constant 0 : i32
    return %arg0, %c0_i32, %c0_i32_0 : i32, i32, i32
  }
  func.func @transform_1(%arg0: i32) -> (i32, i32) {
    %c0_i32 = arith.constant 0 : i32
    %c0_i32_0 = arith.constant 0 : i32
    %c0_i32_1 = arith.constant 0 : i32
    return %c0_i32, %c0_i32_0 : i32, i32
  }
  func.func @transform_2(%arg0: i32) -> (i32, i32) {
    %c0_i32 = arith.constant 0 : i32
    %c0_i32_0 = arith.constant 0 : i32
    %c0_i32_1 = arith.constant 0 : i32
    return %c0_i32, %c0_i32_0 : i32, i32
  }
  func.func @transform_3(%arg0: i32) -> (i32, i32) {
    %c0_i32 = arith.constant 0 : i32
    %c0_i32_0 = arith.constant 0 : i32
    return %arg0, %c0_i32 : i32, i32
  }
  func.func @transform_4(%arg0: i32) -> (i32, i32) {
    %c0_i32 = arith.constant 0 : i32
    %c0_i32_0 = arith.constant 0 : i32
    %c0_i32_1 = arith.constant 0 : i32
    return %c0_i32, %c0_i32_0 : i32, i32
  }
  func.func @transform_5(%arg0: i32) -> (i32, i32, i32) {
    %c0_i32 = arith.constant 0 : i32
    %c0_i32_0 = arith.constant 0 : i32
    %c0_i32_1 = arith.constant 0 : i32
    return %c0_i32, %arg0, %c0_i32_0 : i32, i32, i32
  }
}

</mosaic_0001>

<bundles_post_ra>
// kernel: classify0_forward.1
= control target key start
LH: loop header
LB: loop body
LE: loop exit
PB: predicated region body
PF: predicated region fallthrough
CT: control target
= control target key end

     0   :  { %s1368_s18 = smov 0   ;;  %s1370_s19 = smov 0   ;;  %s2077_s0 = inlined_call_operand.vmem [shape: f32[2,256,256], index: 0, kind: input, shape index: {}]   ;;  %s2078_s1 = inlined_call_operand.vmem [shape: f32[256,128], index: 1, kind: input, shape index: {}]   ;;  %s2079_s2 = inlined_call_operand.vmem [shape: f32[4,128], index: 2, kind: input, shape index: {}]   ;;  %s2080_s3 = inlined_call_operand.vmem [shape: s32[128,1], index: 3, kind: input, shape index: {}]   ;;  %s2081_s4 = inlined_call_operand.vmem [shape: s32[1,128], index: 4, kind: input, shape index: {}]   ;;  %s2082_s5 = inlined_call_operand.vmem [shape: f32[4,128,128], index: 5, kind: output, shape index: {}]  }
   0x1   :  { %s1372_s20 = smov 0  }
   0x2 LB: > { %s1381_s21 = sadd.s32 4294967295, %s1335_s20   ;;  %s1383_s22 = sadd.s32 1, %s1335_s20   ;;  %s1335_s20 = sphi %s1372_s20, %s2087_s20   ;;  %s1331_s19 = sphi %s1370_s19, %s2086_s19   ;;  %s1327_s18 = sphi %s1368_s18, %s2085_s18  }
   0x3   : > { %s134_s23 = ssub.s32 %s1335_s20, %s1383_s22  ;;  %s137_s24 = sadd.s32 1, %s1331_s19 }
   0x4   : > { %p135_p0 = scmp.eq.s32.totalorder %s134_s23, 0  ;;  %p147_p1 = scmp.ne.s32.totalorder %s1331_s19, %s1327_s18 }
   0x5   : > { %p148_p2 = scmp.eq.s32.totalorder %s1381_s21, 1  ;;  %p1135_p3 = scmp.ge.s32.totalorder %s1335_s20, 1 }
   0x6   : > { %s1391_s25 = scalar_select %p135_p0, %s1331_s19, %s137_s24  }
   0x7   : > { %p1393_p4 = por %p148_p2, %p147_p1  ;;  %p198_p5 = scmp.lt.s32.totalorder %s1335_s20, 3 }
   0x9   : > { %p199_p6 = pnand %p1135_p3, %p198_p5 }
   0xa   : > { %p230_p7 = scmp.lt.s32.totalorder (!%p199_p6), %s1381_s21, 1  ;;  %s1139_s27 = sshll.u32 (!%p199_p6), %s1381_s21, 3 }
   0xb   : > { %202 = sbr.rel (%p199_p6) target bundleno = 364 (0x16c), region = 40  ;;  %p1465_p8 = scmp.lt.s32.totalorder (!%p199_p6), %s1139_s27, 15 }
   0xc   : > { %s227_s6 = sand.u32 (!%p199_p6), 1, %s1327_s18  }
   0xd   : > { %s1791_s18 = sshll.u32 (!%p199_p6), %s227_s6, 8 }
   0xe   : > { %s1823_s7 = scalar_lea.vmem (!%p199_p6), [#allocation2], %s1791_s18 }
  0x10   : > { %v321_v0 = vld [vmem:[%s2078_s1 + $0x78] sm:$0xff]  ;;  %v320_v2 = vld [vmem:[%s2078_s1 + $0x70] sm:$0xff]  ;;  %v319_v4 = vld [vmem:[%s2078_s1 + $0x68] sm:$0xff]  ;;  %s231_s12 = scalar_select %p230_p7, %s1381_s21, 1  ;;  %v1337_v38 = vmov 0  }
  0x11   : > { %v337_v1 = vld [vmem:[%s2078_s1 + $0xf8] sm:$0xff]  ;;  %338 = vmatpush.msra.mxu0 %v321_v0  ;;  %1172 = vmatpush.msra.mxu2 %v321_v0  ;;  %v336_v3 = vld [vmem:[%s2078_s1 + $0xf0] sm:$0xff]  ;;  %v335_v5 = vld [vmem:[%s2078_s1 + $0xe8] sm:$0xff]  ;;  %s2089_s27 = smov (!%p1465_p8, %s1139_s27), 15  ;;  %s1171_s8 = sshll.u32 (%p1393_p4), %s1381_s21, 6 }
  0x12   : > { %451 = vmatpush.msra.mxu1 %v337_v1  ;;  %1188 = vmatpush.msra.mxu3 %v337_v1  ;;  %v318_v6 = vld [vmem:[%s2078_s1 + $0x60] sm:$0xff]  ;;  %v317_v8 = vld [vmem:[%s2078_s1 + $0x58] sm:$0xff]  ;;  %v316_v10 = vld [vmem:[%s2078_s1 + $0x50] sm:$0xff]  ;;  %s1170_s28 = sshll.u32 %s231_s12, 9  ;;  %s1140_s13 = sshll.u32 %s2089_s27, 3 }
  0x13   : > { %339 = vmatpush.msra.mxu0 %v320_v2  ;;  %1173 = vmatpush.msra.mxu2 %v320_v2  ;;  %v334_v7 = vld [vmem:[%s2078_s1 + $0xe0] sm:$0xff]  ;;  %v333_v9 = vld [vmem:[%s2078_s1 + $0xd8] sm:$0xff]  ;;  %v332_v11 = vld [vmem:[%s2078_s1 + $0xd0] sm:$0xff]  ;;  %s1501_s12 = scalar_lea.vmem %s2077_s0, %s1170_s28  ;;  %s1514_s27 = scalar_lea.vmem %s2080_s3, %s1140_s13 }
  0x14   : > { %452 = vmatpush.msra.mxu1 %v336_v3  ;;  %1189 = vmatpush.msra.mxu3 %v336_v3  ;;  %v315_v12 = vld [vmem:[%s2078_s1 + $0x48] sm:$0xff]  ;;  %v314_v14 = vld [vmem:[%s2078_s1 + $0x40] sm:$0xff]  ;;  %v313_v16 = vld [vmem:[%s2078_s1 + $0x38] sm:$0xff]  ;;  %s2003_s11 = scalar_lea.vmem (%p1393_p4), %s2082_s5, %s1171_s8 }
  0x15   : > { %340 = vmatpush.msra.mxu0 %v319_v4  ;;  %1174 = vmatpush.msra.mxu2 %v319_v4  ;;  %v331_v13 = vld [vmem:[%s2078_s1 + $0xc8] sm:$0xff]  ;;  %v330_v15 = vld [vmem:[%s2078_s1 + $0xc0] sm:$0xff]  ;;  %v329_v17 = vld [vmem:[%s2078_s1 + $0xb8] sm:$0xff] }
  0x16   : > { %453 = vmatpush.msra.mxu1 %v335_v5  ;;  %1190 = vmatpush.msra.mxu3 %v335_v5  ;;  %v312_v18 = vld [vmem:[%s2078_s1 + $0x30] sm:$0xff]  ;;  %v311_v20 = vld [vmem:[%s2078_s1 + $0x28] sm:$0xff]  ;;  %v310_v22 = vld [vmem:[%s2078_s1 + $0x20] sm:$0xff] }
  0x17   : > { %341 = vmatpush.msra.mxu0 %v318_v6  ;;  %1175 = vmatpush.msra.mxu2 %v318_v6  ;;  %v328_v19 = vld [vmem:[%s2078_s1 + $0xb0] sm:$0xff]  ;;  %v327_v21 = vld [vmem:[%s2078_s1 + $0xa8] sm:$0xff]  ;;  %v326_v23 = vld [vmem:[%s2078_s1 + $0xa0] sm:$0xff] }
  0x18   : > { %454 = vmatpush.msra.mxu1 %v334_v7  ;;  %1191 = vmatpush.msra.mxu3 %v334_v7  ;;  %v309_v24 = vld [vmem:[%s2078_s1 + $0x18] sm:$0xff]  ;;  %v308_v26 = vld [vmem:[%s2078_s1 + $0x10] sm:$0xff]  ;;  %v307_v28 = vld [vmem:[%s2078_s1 + $0x8] sm:$0xff] }
  0x19   : > { %342 = vmatpush.msra.mxu0 %v317_v8  ;;  %1176 = vmatpush.msra.mxu2 %v317_v8  ;;  %v325_v25 = vld [vmem:[%s2078_s1 + $0x98] sm:$0xff]  ;;  %v324_v27 = vld [vmem:[%s2078_s1 + $0x90] sm:$0xff]  ;;  %v323_v29 = vld [vmem:[%s2078_s1 + $0x88] sm:$0xff] }
  0x1a   : > { %455 = vmatpush.msra.mxu1 %v333_v9  ;;  %1192 = vmatpush.msra.mxu3 %v333_v9  ;;  %v306_v30 = vld [vmem:[%s2078_s1] sm:$0xff]  ;;  %v243_v34 = vld [vmem:[%s1501_s12 + $0x8] sm:$0xff]  ;;  %v566_v37 = vld [vmem:[%s1514_s27 + $0x10] sm:$0xff] }
  0x1b   : > { %343 = vmatpush.msra.mxu0 %v316_v10  ;;  %1177 = vmatpush.msra.mxu2 %v316_v10  ;;  %v322_v31 = vld [vmem:[%s2078_s1 + $0x80] sm:$0xff]  ;;  %v275_v35 = vld [vmem:[%s1501_s12 + $0x108] sm:$0xff]  ;;  %v244_v39 = vld [vmem:[%s1501_s12 + $0x10] sm:$0xff] }
  0x1c   : > { %456 = vmatpush.msra.mxu1 %v332_v11  ;;  %1193 = vmatpush.msra.mxu3 %v332_v11  ;;  %v242_v32 = vld [vmem:[%s1501_s12] sm:$0xff]  ;;  %v276_v40 = vld [vmem:[%s1501_s12 + $0x110] sm:$0xff]  ;;  %v245_v41 = vld [vmem:[%s1501_s12 + $0x18] sm:$0xff] }
  0x1d   : > { %344 = vmatpush.msra.mxu0 %v315_v12  ;;  %1178 = vmatpush.msra.mxu2 %v315_v12  ;;  %v274_v33 = vld [vmem:[%s1501_s12 + $0x100] sm:$0xff]  ;;  %v277_v42 = vld [vmem:[%s1501_s12 + $0x118] sm:$0xff]  ;;  %v565_v43 = vld [vmem:[%s1514_s27 + $0x8] sm:$0xff] }
  0x1e   : > { %457 = vmatpush.msra.mxu1 %v331_v13  ;;  %1194 = vmatpush.msra.mxu3 %v331_v13  ;;  %v564_v36 = vld [vmem:[%s1514_s27] sm:$0xff]  ;;  %v567_v44 = vld [vmem:[%s1514_s27 + $0x18] sm:$0xff]  ;;  %v247_v47 = vld [vmem:[%s1501_s12 + $0x28] sm:$0xff] }
  0x1f   : > { %345 = vmatpush.msra.mxu0 %v314_v14  ;;  %1179 = vmatpush.msra.mxu2 %v314_v14  ;;  %v246_v45 = vld [vmem:[%s1501_s12 + $0x20] sm:$0xff]  ;;  %v279_v48 = vld [vmem:[%s1501_s12 + $0x128] sm:$0xff]  ;;  %v248_v49 = vld [vmem:[%s1501_s12 + $0x30] sm:$0xff] }
  0x20   : > { %458 = vmatpush.msra.mxu1 %v330_v15  ;;  %1195 = vmatpush.msra.mxu3 %v330_v15  ;;  %v278_v46 = vld [vmem:[%s1501_s12 + $0x120] sm:$0xff]  ;;  %v280_v50 = vld [vmem:[%s1501_s12 + $0x130] sm:$0xff]  ;;  %v249_v51 = vld [vmem:[%s1501_s12 + $0x38] sm:$0xff] }
  0x21   : > { %346 = vmatpush.msra.mxu0 %v313_v16  ;;  %1180 = vmatpush.msra.mxu2 %v313_v16  ;;  %v281_v52 = vld [vmem:[%s1501_s12 + $0x138] sm:$0xff]  ;;  %v250_v53 = vld [vmem:[%s1501_s12 + $0x40] sm:$0xff]  ;;  %v251_v55 = vld [vmem:[%s1501_s12 + $0x48] sm:$0xff] }
  0x22   : > { %459 = vmatpush.msra.mxu1 %v329_v17  ;;  %1196 = vmatpush.msra.mxu3 %v329_v17  ;;  %v282_v54 = vld [vmem:[%s1501_s12 + $0x140] sm:$0xff]  ;;  %v283_v56 = vld [vmem:[%s1501_s12 + $0x148] sm:$0xff]  ;;  %v570_v57 = vld [vmem:[%s1514_s27 + $0x30] sm:$0xff] }
  0x23   : > { %347 = vmatpush.msra.mxu0 %v312_v18  ;;  %1181 = vmatpush.msra.mxu2 %v312_v18  ;;  %v252_v58 = vld [vmem:[%s1501_s12 + $0x50] sm:$0xff]  ;;  %v253_v60 = vld [vmem:[%s1501_s12 + $0x58] sm:$0xff]  ;;  %v568_v62 = vld [vmem:[%s1514_s27 + $0x20] sm:$0xff] }
  0x24   : > { %460 = vmatpush.msra.mxu1 %v328_v19  ;;  %1197 = vmatpush.msra.mxu3 %v328_v19  ;;  %v284_v59 = vld [vmem:[%s1501_s12 + $0x150] sm:$0xff]  ;;  %v285_v61 = vld [vmem:[%s1501_s12 + $0x158] sm:$0xff]  ;;  %v254_v0 = vld [vmem:[%s1501_s12 + $0x60] sm:$0xff] }
  0x25   : > { %348 = vmatpush.msra.mxu0 %v311_v20  ;;  %1182 = vmatpush.msra.mxu2 %v311_v20  ;;  %v571_v63 = vld [vmem:[%s1514_s27 + $0x38] sm:$0xff]  ;;  %v286_v1 = vld [vmem:[%s1501_s12 + $0x160] sm:$0xff]  ;;  %v255_v2 = vld [vmem:[%s1501_s12 + $0x68] sm:$0xff] }
  0x26   : > { %461 = vmatpush.msra.mxu1 %v327_v21  ;;  %1198 = vmatpush.msra.mxu3 %v327_v21  ;;  %v287_v3 = vld [vmem:[%s1501_s12 + $0x168] sm:$0xff]  ;;  %v256_v5 = vld [vmem:[%s1501_s12 + $0x70] sm:$0xff]  ;;  %v257_v7 = vld [vmem:[%s1501_s12 + $0x78] sm:$0xff] }
  0x27   : > { %349 = vmatpush.msra.mxu0 %v310_v22  ;;  %1183 = vmatpush.msra.mxu2 %v310_v22  ;;  %v569_v4 = vld [vmem:[%s1514_s27 + $0x28] sm:$0xff]  ;;  %v288_v6 = vld [vmem:[%s1501_s12 + $0x170] sm:$0xff]  ;;  %v289_v8 = vld [vmem:[%s1501_s12 + $0x178] sm:$0xff] }
  0x28   : > { %462 = vmatpush.msra.mxu1 %v326_v23  ;;  %1199 = vmatpush.msra.mxu3 %v326_v23  ;;  %v258_v9 = vld [vmem:[%s1501_s12 + $0x80] sm:$0xff]  ;;  %v259_v11 = vld [vmem:[%s1501_s12 + $0x88] sm:$0xff]  ;;  %v260_v13 = vld [vmem:[%s1501_s12 + $0x90] sm:$0xff] }
  0x29   : > { %350 = vmatpush.msra.mxu0 %v309_v24  ;;  %1184 = vmatpush.msra.mxu2 %v309_v24  ;;  %v290_v10 = vld [vmem:[%s1501_s12 + $0x180] sm:$0xff]  ;;  %v291_v12 = vld [vmem:[%s1501_s12 + $0x188] sm:$0xff]  ;;  %v292_v14 = vld [vmem:[%s1501_s12 + $0x190] sm:$0xff] }
  0x2a   : > { %463 = vmatpush.msra.mxu1 %v325_v25  ;;  %1200 = vmatpush.msra.mxu3 %v325_v25  ;;  %v261_v15 = vld [vmem:[%s1501_s12 + $0x98] sm:$0xff]  ;;  %v262_v17 = vld [vmem:[%s1501_s12 + $0xa0] sm:$0xff]  ;;  %v263_v19 = vld [vmem:[%s1501_s12 + $0xa8] sm:$0xff] }
  0x2b   : > { %351 = vmatpush.msra.mxu0 %v308_v26  ;;  %1185 = vmatpush.msra.mxu2 %v308_v26  ;;  %v293_v16 = vld [vmem:[%s1501_s12 + $0x198] sm:$0xff]  ;;  %v294_v18 = vld [vmem:[%s1501_s12 + $0x1a0] sm:$0xff]  ;;  %v295_v20 = vld [vmem:[%s1501_s12 + $0x1a8] sm:$0xff] }
  0x2c   : > { %464 = vmatpush.msra.mxu1 %v324_v27  ;;  %1201 = vmatpush.msra.mxu3 %v324_v27  ;;  %v264_v21 = vld [vmem:[%s1501_s12 + $0xb0] sm:$0xff]  ;;  %v265_v23 = vld [vmem:[%s1501_s12 + $0xb8] sm:$0xff]  ;;  %v266_v25 = vld [vmem:[%s1501_s12 + $0xc0] sm:$0xff] }
  0x2d   : > { %352 = vmatpush.msra.mxu0 %v307_v28  ;;  %1186 = vmatpush.msra.mxu2 %v307_v28  ;;  %v296_v22 = vld [vmem:[%s1501_s12 + $0x1b0] sm:$0xff]  ;;  %v297_v24 = vld [vmem:[%s1501_s12 + $0x1b8] sm:$0xff]  ;;  %v298_v26 = vld [vmem:[%s1501_s12 + $0x1c0] sm:$0xff] }
  0x2e   : > { %465 = vmatpush.msra.mxu1 %v323_v29  ;;  %1202 = vmatpush.msra.mxu3 %v323_v29  ;;  %v267_v27 = vld [vmem:[%s1501_s12 + $0xc8] sm:$0xff]  ;;  %v268_v29 = vld [vmem:[%s1501_s12 + $0xd0] sm:$0xff] }
  0x2f   : > { %353 = vmatpush.msra.mxu0 %v306_v30  ;;  %1187 = vmatpush.msra.mxu2 %v306_v30  ;;  %v299_v28 = vld [vmem:[%s1501_s12 + $0x1c8] sm:$0xff]  ;;  %v300_v30 = vld [vmem:[%s1501_s12 + $0x1d0] sm:$0xff] }
  0x30   : > { %466 = vmatpush.msra.mxu1 %v322_v31  ;;  %1203 = vmatpush.msra.mxu3 %v322_v31  ;;  %v269_v31 = vld [vmem:[%s1501_s12 + $0xd8] sm:$0xff] }
  0x31   : > { %354 = vmatmul.f32.vlgmr.msra.gmra.mxu0 %v242_v32  ;;  %402 = vmatmul.f32.vlgmr.msra.gmra.mxu2 %v274_v33  ;;  %v301_v32 = vld [vmem:[%s1501_s12 + $0x1d8] sm:$0xff]  ;;  %v270_v33 = vld [vmem:[%s1501_s12 + $0xe0] sm:$0xff] }
  0x32   : > { %467 = vmatmul.f32.vlgmr.msra.gmra.mxu1 %v243_v34  ;;  %515 = vmatmul.f32.vlgmr.msra.gmra.mxu3 %v275_v35  ;;  %v302_v34 = vld [vmem:[%s1501_s12 + $0x1e0] sm:$0xff]  ;;  %v271_v35 = vld [vmem:[%s1501_s12 + $0xe8] sm:$0xff] }
  0x33   : > { %1229 = vset.pattern.permute.xlu0 %v1337_v38  ;;  %1230 = vset.pattern.permute.xlu1 %v1337_v38 }
  0x34   : > { %575 = vperm.xlu0 %1229, %v564_v36   ;;  %581 = vperm.xlu1 %1230, %v566_v37   ;;  %v303_v36 = vld [vmem:[%s1501_s12 + $0x1e8] sm:$0xff]  ;;  %v272_v37 = vld [vmem:[%s1501_s12 + $0xf0] sm:$0xff] }
  0x35   : > { %1231 = vset.pattern.permute.xlu2 %v1337_v38  ;;  %v304_v38 = vld [vmem:[%s1501_s12 + $0x1f0] sm:$0xff] }
  0x36   : > { %587 = vperm.xlu2 %1231, %v568_v62  }
  0x39   : > { %357 = vmatmul.f32.gmra.mxu0 %v244_v39  ;;  %405 = vmatmul.f32.gmra.mxu2 %v276_v40  ;;  %v273_v39 = vld [vmem:[%s1501_s12 + $0xf8] sm:$0xff] }
  0x3a   : > { %470 = vmatmul.f32.gmra.mxu1 %v245_v41  ;;  %518 = vmatmul.f32.gmra.mxu3 %v277_v42  ;;  %v305_v40 = vld [vmem:[%s1501_s12 + $0x1f8] sm:$0xff] }
  0x3c   : > { %578 = vperm.xlu0 %1229, %v565_v43   ;;  %584 = vperm.xlu1 %1230, %v567_v44  }
  0x3e   : > { %590 = vperm.xlu2 %1231, %v569_v4  }
  0x41   : > { %360 = vmatmul.f32.gmra.mxu0 %v246_v45  ;;  %408 = vmatmul.f32.gmra.mxu2 %v278_v46 }
  0x42   : > { %473 = vmatmul.f32.gmra.mxu1 %v247_v47  ;;  %521 = vmatmul.f32.gmra.mxu3 %v279_v48 }
  0x44   : > { %593 = vperm.xlu0 %1229, %v570_v57   ;;  %596 = vperm.xlu1 %1230, %v571_v63  }
  0x49   : > { %363 = vmatmul.f32.gmra.mxu0 %v248_v49  ;;  %411 = vmatmul.f32.gmra.mxu2 %v280_v50 }
  0x4a   : > { %476 = vmatmul.f32.gmra.mxu1 %v249_v51  ;;  %524 = vmatmul.f32.gmra.mxu3 %v281_v52 }
  0x51   : > { %366 = vmatmul.f32.gmra.mxu0 %v250_v53  ;;  %414 = vmatmul.f32.gmra.mxu2 %v282_v54 }
  0x52   : > { %479 = vmatmul.f32.gmra.mxu1 %v251_v55  ;;  %527 = vmatmul.f32.gmra.mxu3 %v283_v56 }
  0x59   : > { %369 = vmatmul.f32.gmra.mxu0 %v252_v58  ;;  %417 = vmatmul.f32.gmra.mxu2 %v284_v59 }
  0x5a   : > { %482 = vmatmul.f32.gmra.mxu1 %v253_v60  ;;  %530 = vmatmul.f32.gmra.mxu3 %v285_v61 }
  0x61   : > { %372 = vmatmul.f32.gmra.mxu0 %v254_v0  ;;  %420 = vmatmul.f32.gmra.mxu2 %v286_v1 }
  0x62   : > { %485 = vmatmul.f32.gmra.mxu1 %v255_v2  ;;  %533 = vmatmul.f32.gmra.mxu3 %v287_v3 }
  0x69   : > { %375 = vmatmul.f32.gmra.mxu0 %v256_v5  ;;  %423 = vmatmul.f32.gmra.mxu2 %v288_v6 }
  0x6a   : > { %488 = vmatmul.f32.gmra.mxu1 %v257_v7  ;;  %536 = vmatmul.f32.gmra.mxu3 %v289_v8 }
  0x71   : > { %378 = vmatmul.f32.gmra.mxu0 %v258_v9  ;;  %426 = vmatmul.f32.gmra.mxu2 %v290_v10 }
  0x72   : > { %491 = vmatmul.f32.gmra.mxu1 %v259_v11  ;;  %539 = vmatmul.f32.gmra.mxu3 %v291_v12 }
  0x79   : > { %381 = vmatmul.f32.gmra.mxu0 %v260_v13  ;;  %429 = vmatmul.f32.gmra.mxu2 %v292_v14 }
  0x7a   : > { %494 = vmatmul.f32.gmra.mxu1 %v261_v15  ;;  %542 = vmatmul.f32.gmra.mxu3 %v293_v16 }
  0x81   : > { %384 = vmatmul.f32.gmra.mxu0 %v262_v17  ;;  %432 = vmatmul.f32.gmra.mxu2 %v294_v18 }
  0x82   : > { %497 = vmatmul.f32.gmra.mxu1 %v263_v19  ;;  %545 = vmatmul.f32.gmra.mxu3 %v295_v20 }
  0x89   : > { %387 = vmatmul.f32.gmra.mxu0 %v264_v21  ;;  %435 = vmatmul.f32.gmra.mxu2 %v296_v22 }
  0x8a   : > { %500 = vmatmul.f32.gmra.mxu1 %v265_v23  ;;  %548 = vmatmul.f32.gmra.mxu3 %v297_v24 }
  0x91   : > { %390 = vmatmul.f32.gmra.mxu0 %v266_v25  ;;  %438 = vmatmul.f32.gmra.mxu2 %v298_v26  ;;  %v606_v26 = vld [vmem:[%s2079_s2] sm:$0xf] }
  0x92   : > { %503 = vmatmul.f32.gmra.mxu1 %v267_v27  ;;  %551 = vmatmul.f32.gmra.mxu3 %v299_v28 }
  0x99   : > { %393 = vmatmul.f32.gmra.mxu0 %v268_v29  ;;  %441 = vmatmul.f32.gmra.mxu2 %v300_v30  ;;  %v1619_v29 = vperm.slane %v606_v26, 1  ;;  %v1621_v30 = vperm.slane %v606_v26, 2 }
  0x9a   : > { %506 = vmatmul.f32.gmra.mxu1 %v269_v31  ;;  %554 = vmatmul.f32.gmra.mxu3 %v301_v32  ;;  %v1626_v32 = vld [vmem:[%s2081_s4] ss:$0 sm:$0xff] }
  0xa1   : > { %396 = vmatmul.f32.gmra.mxu0 %v270_v33  ;;  %444 = vmatmul.f32.gmra.mxu2 %v302_v34 }
  0xa2   : > { %509 = vmatmul.f32.gmra.mxu1 %v271_v35  ;;  %557 = vmatmul.f32.gmra.mxu3 %v303_v36  ;;  %v1629_v35 = vperm.slane %v606_v26, 3  ;;  %v1631_v36 = vperm.slane %v606_v26, 0 }
  0xa6   : > { %v576_v31 = vpop.permute.xlu0 %575 }
  0xa7   : > { %vm598_vm0 = vcmp.ge.s32.totalorder %v1626_v32, %v576_v31 }
  0xa9   : > { %399 = vmatmul.f32.gmra.mxu0 %v272_v37  ;;  %447 = vmatmul.f32.gmra.mxu2 %v304_v38 }
  0xaa   : > { %512 = vmatmul.f32.gmra.mxu1 %v273_v39  ;;  %560 = vmatmul.f32.gmra.mxu3 %v305_v40 }
  0xae   : > { %v355_v41 = vpop.f32.mrf.mxu0 }
  0xaf   : > { %v468_v42 = vpop.f32.mrf.mxu1 }
  0xb0   : > { %v1586_v43 = vadd.f32 %v468_v42, %v355_v41 }
  0xb4   : > { %v403_v44 = vpop.f32.mrf.mxu2 }
  0xb5   : > { %v516_v45 = vpop.f32.mrf.mxu3 }
  0xb6   : > { %v517_v46 = vadd.f32 %v516_v45, %v403_v44  ;;  %v358_v47 = vpop.f32.mrf.mxu0 }
  0xb7   : > { %v471_v48 = vpop.f32.mrf.mxu1 }
  0xb8   : > { %v1588_v49 = vadd.f32 %v471_v48, %v358_v47  ;;  %v634_v38 = vadd.f32 %v1621_v30, %v517_v46  ;;  %v1640_v47 = vadd.f32 %v1631_v36, %v1586_v43 }
  0xba   : > { %v1642_v48 = vsel %vm598_vm0, -1e+09, %v634_v38 }
  0xbc   : > { %v406_v50 = vpop.f32.mrf.mxu2 }
  0xbd   : > { %v519_v51 = vpop.f32.mrf.mxu3 }
  0xbe   : > { %v1590_v52 = vadd.f32 %v519_v51, %v406_v50  ;;  %v361_v53 = vpop.f32.mrf.mxu0 }
  0xbf   : > { %v474_v54 = vpop.f32.mrf.mxu1 }
  0xc0   : > { %v1592_v55 = vadd.f32 %v474_v54, %v361_v53  ;;  %v579_v53 = vpop.permute.xlu0 %578  ;;  %v635_v43 = vadd.f32 %v1621_v30, %v1590_v52 }
  0xc1   : > { %vm599_vm1 = vcmp.ge.s32.totalorder %v1626_v32, %v579_v53 }
  0xc4   : > { %v409_v56 = vpop.f32.mrf.mxu2 }
  0xc5   : > { %v522_v57 = vpop.f32.mrf.mxu3 }
  0xc6   : > { %v1594_v58 = vadd.f32 %v522_v57, %v409_v56  ;;  %v364_v59 = vpop.f32.mrf.mxu0 }
  0xc7   : > { %v477_v60 = vpop.f32.mrf.mxu1 }
  0xc8   : > { %v1596_v61 = vadd.f32 %v477_v60, %v364_v59 }
  0xcc   : > { %v412_v62 = vpop.f32.mrf.mxu2 }
  0xcd   : > { %v525_v63 = vpop.f32.mrf.mxu3 }
  0xce   : > { %v1598_v0 = vadd.f32 %v525_v63, %v412_v62  ;;  %v367_v1 = vpop.f32.mrf.mxu0  ;;  %v582_v63 = vpop.permute.xlu1 %581 }
  0xcf   : > { %v480_v2 = vpop.f32.mrf.mxu1  ;;  %vm600_vm2 = vcmp.ge.s32.totalorder %v1626_v32, %v582_v63 }
  0xd0   : > { %v1600_v3 = vadd.f32 %v480_v2, %v367_v1  ;;  %v637_v63 = vadd.f32 %v1621_v30, %v1598_v0 }
  0xd4   : > { %v415_v4 = vpop.f32.mrf.mxu2 }
  0xd5   : > { %v528_v5 = vpop.f32.mrf.mxu3 }
  0xd6   : > { %v1602_v6 = vadd.f32 %v528_v5, %v415_v4  ;;  %v370_v7 = vpop.f32.mrf.mxu0  ;;  %v585_v53 = vpop.permute.xlu1 %584 }
  0xd7   : > { %v483_v8 = vpop.f32.mrf.mxu1  ;;  %vm601_vm3 = vcmp.ge.s32.totalorder %v1626_v32, %v585_v53 }
  0xd8   : > { %v1604_v9 = vadd.f32 %v483_v8, %v370_v7 }
  0xdc   : > { %v418_v10 = vpop.f32.mrf.mxu2 }
  0xdd   : > { %v531_v11 = vpop.f32.mrf.mxu3 }
  0xde   : > { %v1606_v12 = vadd.f32 %v531_v11, %v418_v10  ;;  %v373_v13 = vpop.f32.mrf.mxu0  ;;  %v1669_v11 = vadd.f32 %v1631_v36, %v1588_v49 }
  0xdf   : > { %v486_v14 = vpop.f32.mrf.mxu1 }
  0xe0   : > { %v1608_v15 = vadd.f32 %v486_v14, %v373_v13 }
  0xe4   : > { %v421_v16 = vpop.f32.mrf.mxu2 }
  0xe5   : > { %v534_v17 = vpop.f32.mrf.mxu3 }
  0xe6   : > { %v1610_v18 = vadd.f32 %v534_v17, %v421_v16  ;;  %v376_v19 = vpop.f32.mrf.mxu0  ;;  %v1671_v16 = vsel %vm599_vm1, -1e+09, %v635_v43 }
  0xe7   : > { %v489_v20 = vpop.f32.mrf.mxu1 }
  0xe8   : > { %v1612_v21 = vadd.f32 %v489_v20, %v376_v19 }
  0xec   : > { %v424_v22 = vpop.f32.mrf.mxu2 }
  0xed   : > { %v537_v23 = vpop.f32.mrf.mxu3 }
  0xee   : > { %v1614_v24 = vadd.f32 %v537_v23, %v424_v22  ;;  %v379_v25 = vpop.f32.mrf.mxu0 }
  0xef   : > { %v492_v27 = vpop.f32.mrf.mxu1 }
  0xf0   : > { %v493_v28 = vadd.f32 %v492_v27, %v379_v25 }
  0xf2   : > { %v617_v33 = vadd.f32 %v1619_v29, %v493_v28  ;;  %v636_v28 = vadd.f32 %v1621_v30, %v1594_v58 }
  0xf4   : > { %v427_v34 = vpop.f32.mrf.mxu2  ;;  %v1635_v42 = vsel %vm598_vm0, -1e+09, %v617_v33  ;;  %v1706_v43 = vsel %vm600_vm2, -1e+09, %v636_v28 }
  0xf5   : > { %v540_v37 = vpop.f32.mrf.mxu3  ;;  %v667_v46 = vmax.f32 %v1640_v47, %v1635_v42 }
  0xf6   : > { %v541_v39 = vadd.f32 %v540_v37, %v427_v34  ;;  %v382_v40 = vpop.f32.mrf.mxu0  ;;  %v1685_v34 = vpop.permute.xlu2 %587 }
  0xf7   : > { %v495_v41 = vpop.f32.mrf.mxu1  ;;  %vm602_vm4 = vcmp.ge.s32.totalorder %v1626_v32, %v1685_v34 }
  0xf8   : > { %v651_v44 = vadd.f32 %v1629_v35, %v541_v39  ;;  %v496_v45 = vadd.f32 %v495_v41, %v382_v40 }
  0xfa   : > { %v1644_v50 = vsel %vm598_vm0, -1e+09, %v651_v44  ;;  %v618_v54 = vadd.f32 %v1619_v29, %v496_v45 }
  0xfb   : > { %v675_v51 = vmax.f32 %v1642_v48, %v1644_v50 }
  0xfc   : > { %v430_v56 = vpop.f32.mrf.mxu2  ;;  %v1664_v8 = vsel %vm599_vm1, -1e+09, %v618_v54 }
  0xfd   : > { %v1651_v57 = vmax.f32 %v667_v46, %v675_v51  ;;  %v543_v59 = vpop.f32.mrf.mxu3  ;;  %v668_v20 = vmax.f32 %v1669_v11, %v1664_v8  ;;  %v1702_v51 = vadd.f32 %v1631_v36, %v1592_v55 }
  0xfe   : > { %v544_v60 = vadd.f32 %v543_v59, %v430_v56  ;;  %v385_v62 = vpop.f32.mrf.mxu0 }
  0xff   : > { %v691_v1 = vsub.f32 %v1640_v47, %v1651_v57  ;;  %v715_v2 = vsub.f32 %v1635_v42, %v1651_v57  ;;  %v747_v4 = vsub.f32 %v1642_v48, %v1651_v57  ;;  %v498_v5 = vpop.f32.mrf.mxu1  ;;  %v779_v7 = vsub.f32 %v1644_v50, %v1651_v57 }
 0x100   : > { %v652_v52 = vadd.f32 %v1629_v35, %v544_v60  ;;  %v499_v10 = vadd.f32 %v498_v5, %v385_v62 }
 0x101   : > { %v699_v13 = vmul.f32 1.442695, %v691_v1  ;;  %v723_v14 = vmul.f32 1.442695, %v715_v2  ;;  %v755_v17 = vmul.f32 1.442695, %v747_v4 }
 0x102   : > { %v1673_v19 = vsel %vm599_vm1, -1e+09, %v652_v52  ;;  %v619_v23 = vadd.f32 %v1619_v29, %v499_v10  ;;  %v787_v25 = vmul.f32 1.442695, %v779_v7 }
 0x103   : > { %1233 = vpow2.f32 %v699_v13  ;;  %v676_v22 = vmax.f32 %v1671_v16, %v1673_v19 }
 0x104   : > { %1235 = vpow2.f32 %v723_v14  ;;  %v433_v49 = vpop.f32.mrf.mxu2  ;;  %v1695_v40 = vsel %vm600_vm2, -1e+09, %v619_v23 }
 0x105   : > { %v1680_v26 = vmax.f32 %v668_v20, %v676_v22  ;;  %v546_v27 = vpop.f32.mrf.mxu3  ;;  %1237 = vpow2.f32 %v755_v17  ;;  %v669_v55 = vmax.f32 %v1702_v51, %v1695_v40  ;;  %v1726_v20 = vadd.f32 %v1631_v36, %v1596_v61 }
 0x106   : > { %v547_v31 = vadd.f32 %v546_v27, %v433_v49  ;;  %v388_v33 = vpop.f32.mrf.mxu0  ;;  %1239 = vpow2.f32 %v787_v25 }
 0x107   : > { %v692_v37 = vsub.f32 %v1669_v11, %v1680_v26  ;;  %v716_v38 = vsub.f32 %v1664_v8, %v1680_v26  ;;  %v748_v39 = vsub.f32 %v1671_v16, %v1680_v26  ;;  %v501_v58 = vpop.f32.mrf.mxu1  ;;  %v780_v41 = vsub.f32 %v1673_v19, %v1680_v26 }
 0x108   : > { %v653_v44 = vadd.f32 %v1629_v35, %v547_v31  ;;  %v502_v45 = vadd.f32 %v501_v58, %v388_v33  ;;  %v1745_v58 = vpop.permute.xlu2 %590 }
 0x109   : > { %v1234_v46 = vpop.eup %1233  ;;  %v701_v54 = vmul.f32 1.442695, %v692_v37  ;;  %v725_v56 = vmul.f32 1.442695, %v716_v38  ;;  %v757_v60 = vmul.f32 1.442695, %v748_v39  ;;  %vm603_vm5 = vcmp.ge.s32.totalorder %v1626_v32, %v1745_v58 }
 0x10a   : > { %v1236_v59 = vpop.eup %1235  ;;  %v1710_v62 = vsel %vm600_vm2, -1e+09, %v653_v44  ;;  %v620_v1 = vadd.f32 %v1619_v29, %v502_v45  ;;  %v789_v7 = vmul.f32 1.442695, %v780_v41  ;;  %v1743_v39 = vsel %vm601_vm3, -1e+09, %v637_v63 }
 0x10b   : > { %v739_v2 = vadd.f32 %v1236_v59, %v1234_v46  ;;  %1241 = vpow2.f32 %v701_v54  ;;  %v677_v4 = vmax.f32 %v1706_v43, %v1710_v62  ;;  %v1238_v5 = vpop.eup %1237  ;;  %v638_v46 = vadd.f32 %v1621_v30, %v1602_v6 }
 0x10c   : > { %1243 = vpow2.f32 %v725_v56  ;;  %v436_v52 = vpop.f32.mrf.mxu2  ;;  %v1240_v17 = vpop.eup %1239  ;;  %v1730_v22 = vsel %vm601_vm3, -1e+09, %v620_v1  ;;  %v1760_v6 = vadd.f32 %v1631_v36, %v1600_v3 }
 0x10d   : > { %v771_v10 = vadd.f32 %v1238_v5, %v739_v2  ;;  %v1722_v13 = vmax.f32 %v669_v55, %v677_v4  ;;  %v549_v14 = vpop.f32.mrf.mxu3  ;;  %1245 = vpow2.f32 %v757_v60  ;;  %v670_v1 = vmax.f32 %v1726_v20, %v1730_v22 }
 0x10e   : > { %v550_v23 = vadd.f32 %v549_v14, %v436_v52  ;;  %v391_v25 = vpop.f32.mrf.mxu0  ;;  %1247 = vpow2.f32 %v789_v7  ;;  %v1766_v5 = vadd.f32 %v1631_v36, %v1604_v9  ;;  %v639_v7 = vadd.f32 %v1621_v30, %v1606_v12 }
 0x10f   : > { %v803_v0 = vadd.f32 %v1240_v17, %v771_v10  ;;  %v693_v49 = vsub.f32 %v1702_v51, %v1722_v13  ;;  %v717_v27 = vsub.f32 %v1695_v40, %v1722_v13  ;;  %v749_v28 = vsub.f32 %v1706_v43, %v1722_v13  ;;  %v504_v31 = vpop.f32.mrf.mxu1 }
 0x110   : > { %v781_v61 = vsub.f32 %v1710_v62, %v1722_v13  ;;  %v654_v33 = vadd.f32 %v1629_v35, %v550_v23  ;;  %v505_v37 = vadd.f32 %v504_v31, %v391_v25  ;;  %v1776_v14 = vsel %vm602_vm4, -1e+09, %v638_v46  ;;  %v1789_v31 = vpop.permute.xlu0 %593 }
 0x111   : > { %v1242_v38 = vpop.eup %1241  ;;  %1249 = vlog2.f32 %v803_v0  ;;  %v703_v41 = vmul.f32 1.442695, %v693_v49  ;;  %v727_v44 = vmul.f32 1.442695, %v717_v27  ;;  %v759_v54 = vmul.f32 1.442695, %v749_v28 }
 0x112   : > { %v1244_v45 = vpop.eup %1243  ;;  %v1751_v56 = vsel %vm601_vm3, -1e+09, %v654_v33  ;;  %v621_v59 = vadd.f32 %v1619_v29, %v505_v37  ;;  %v791_v53 = vmul.f32 1.442695, %v781_v61  ;;  %vm604_vm6 = vcmp.ge.s32.totalorder %v1626_v32, %v1789_v31 }
 0x113   : > { %v740_v60 = vadd.f32 %v1244_v45, %v1242_v38  ;;  %1251 = vpow2.f32 %v703_v41  ;;  %v678_v2 = vmax.f32 %v1743_v39, %v1751_v56  ;;  %v1246_v55 = vpop.eup %1245  ;;  %v1797_v41 = vsel %vm603_vm5, -1e+09, %v639_v7 }
 0x114   : > { %1253 = vpow2.f32 %v727_v44  ;;  %v439_v4 = vpop.f32.mrf.mxu2  ;;  %v1248_v3 = vpop.eup %1247  ;;  %v1781_v9 = vsel %vm602_vm4, -1e+09, %v621_v59 }
 0x115   : > { %v772_v52 = vadd.f32 %v1246_v55, %v740_v60  ;;  %v1771_v63 = vmax.f32 %v670_v1, %v678_v2  ;;  %v552_v10 = vpop.f32.mrf.mxu3  ;;  %1255 = vpow2.f32 %v759_v54 }
 0x116   : > { %v553_v17 = vadd.f32 %v552_v10, %v439_v4  ;;  %v394_v23 = vpop.f32.mrf.mxu0  ;;  %1257 = vpow2.f32 %v791_v53  ;;  %v671_v53 = vmax.f32 %v1760_v6, %v1781_v9 }
 0x117   : > { %v1250_v12 = vpop.eup %1249  ;;  %v804_v25 = vadd.f32 %v1248_v3, %v772_v52  ;;  %v694_v0 = vsub.f32 %v1726_v20, %v1771_v63  ;;  %v718_v49 = vsub.f32 %v1730_v22, %v1771_v63  ;;  %v750_v27 = vsub.f32 %v1743_v39, %v1771_v63  ;;  %v507_v28 = vpop.f32.mrf.mxu1 }
 0x118   : > { %v812_v61 = vmul.f32 0.6931472, %v1250_v12  ;;  %v655_v33 = vadd.f32 %v1629_v35, %v553_v17  ;;  %v508_v37 = vadd.f32 %v507_v28, %v394_v23  ;;  %v782_v59 = vsub.f32 %v1751_v56, %v1771_v63 }
 0x119   : > { %v1252_v38 = vpop.eup %1251  ;;  %1259 = vlog2.f32 %v804_v25  ;;  %v705_v44 = vmul.f32 1.442695, %v694_v0  ;;  %v729_v45 = vmul.f32 1.442695, %v718_v49  ;;  %v761_v55 = vmul.f32 1.442695, %v750_v27 }
 0x11a   : > { %v1254_v46 = vpop.eup %1253  ;;  %v827_v54 = vadd.f32 %v812_v61, %v1651_v57  ;;  %v1805_v60 = vsel %vm602_vm4, -1e+09, %v655_v33  ;;  %v622_v1 = vadd.f32 %v1619_v29, %v508_v37  ;;  %v640_v0 = vadd.f32 %v1621_v30, %v1610_v18 }
 0x11b   : > { %v741_v2 = vadd.f32 %v1254_v46, %v1252_v38  ;;  %v679_v57 = vmax.f32 %v1776_v14, %v1805_v60  ;;  %v1256_v4 = vpop.eup %1255  ;;  %1261 = vpow2.f32 %v705_v44 }
 0x11c   : > { %v835_v7 = vsub.f32 %v1640_v47, %v827_v54  ;;  %v851_v34 = vsub.f32 %v1635_v42, %v827_v54  ;;  %v868_v52 = vsub.f32 %v1642_v48, %v827_v54  ;;  %v442_v10 = vpop.f32.mrf.mxu2  ;;  %v885_v3 = vsub.f32 %v1644_v50, %v827_v54  ;;  %v1258_v25 = vpop.eup %1257 }
 0x11d   : > { %v773_v17 = vadd.f32 %v1256_v4, %v741_v2  ;;  %1263 = vpow2.f32 %v729_v45  ;;  %v1818_v23 = vmax.f32 %v671_v53, %v679_v57  ;;  %v555_v12 = vpop.f32.mrf.mxu3  ;;  %v793_v42 = vmul.f32 1.442695, %v782_v59 }
 0x11e   : > { %843 = vst [vmem:[%s1823_s7] sm:$0xff] %v835_v7  ;;  %v1829_v47 = vsel %vm603_vm5, -1e+09, %v622_v1  ;;  %v556_v48 = vadd.f32 %v555_v12, %v442_v10  ;;  %v397_v50 = vpop.f32.mrf.mxu0  ;;  %1265 = vpow2.f32 %v761_v55 }
 0x11f   : > { %v1260_v49 = vpop.eup %1259  ;;  %1141 = vst [vmem:[%s1823_s7 + $0x40] sm:$0xff] %v851_v34  ;;  %v805_v27 = vadd.f32 %v1258_v25, %v773_v17  ;;  %v695_v18 = vsub.f32 %v1760_v6, %v1818_v23  ;;  %v719_v28 = vsub.f32 %v1781_v9, %v1818_v23  ;;  %v510_v61 = vpop.f32.mrf.mxu1  ;;  %v751_v37 = vsub.f32 %v1776_v14, %v1818_v23 }
 0x120   : > { %1149 = vst [vmem:[%s1823_s7 + $0x80] sm:$0xff] %v868_v52  ;;  %v814_v33 = vmul.f32 0.6931472, %v1260_v49  ;;  %v783_v38 = vsub.f32 %v1805_v60, %v1818_v23  ;;  %v656_v44 = vadd.f32 %v1629_v35, %v556_v48  ;;  %v511_v54 = vadd.f32 %v510_v61, %v397_v50 }
 0x121   : > { %1157 = vst [vmem:[%s1823_s7 + $0xc0] sm:$0xff] %v885_v3  ;;  %1267 = vlog2.f32 %v805_v27  ;;  %v707_v45 = vmul.f32 1.442695, %v695_v18  ;;  %v731_v46 = vmul.f32 1.442695, %v719_v28  ;;  %v1262_v59 = vpop.eup %1261  ;;  %v672_v2 = vmax.f32 %v1766_v5, %v1829_v47 }
 0x122   : > { %v828_v1 = vadd.f32 %v814_v33, %v1680_v26  ;;  %1269 = vpow2.f32 %v793_v42  ;;  %v1849_v55 = vsel %vm603_vm5, -1e+09, %v656_v44  ;;  %v763_v57 = vmul.f32 1.442695, %v751_v37 }
 0x123   : > { %v1264_v53 = vpop.eup %1263  ;;  %v795_v4 = vmul.f32 1.442695, %v783_v38  ;;  %v680_v7 = vmax.f32 %v1797_v41, %v1849_v55  ;;  %v623_v34 = vadd.f32 %v1619_v29, %v511_v54  ;;  %1271 = vpow2.f32 %v707_v45 }
 0x124   : > { %v836_v26 = vsub.f32 %v1669_v11, %v828_v1  ;;  %v852_v52 = vsub.f32 %v1664_v8, %v828_v1  ;;  %v869_v10 = vsub.f32 %v1671_v16, %v828_v1  ;;  %v445_v58 = vpop.f32.mrf.mxu2  ;;  %v1266_v3 = vpop.eup %1265  ;;  %v886_v17 = vsub.f32 %v1673_v19, %v828_v1 }
 0x125   : > { %v742_v12 = vadd.f32 %v1264_v53, %v1262_v59  ;;  %1273 = vpow2.f32 %v731_v46  ;;  %v1858_v25 = vmax.f32 %v672_v2, %v680_v7  ;;  %v558_v42 = vpop.f32.mrf.mxu3  ;;  %v1862_v48 = vadd.f32 %v1631_v36, %v1608_v15 }
 0x126   : > { %v1867_v8 = vsel %vm604_vm6, -1e+09, %v640_v0  ;;  %844 = vst [vmem:[%s1823_s7 + $0x8] sm:$0xff] %v836_v26  ;;  %v559_v11 = vadd.f32 %v558_v42, %v445_v58  ;;  %v1878_v15 = vsel %vm604_vm6, -1e+09, %v623_v34  ;;  %v400_v27 = vpop.f32.mrf.mxu0  ;;  %1275 = vpow2.f32 %v763_v57  ;;  %v597_v26 = vpop.permute.xlu1 %596 }
 0x127   : > { %v1268_v16 = vpop.eup %1267  ;;  %1142 = vst [vmem:[%s1823_s7 + $0x48] sm:$0xff] %v852_v52  ;;  %v774_v19 = vadd.f32 %v1266_v3, %v742_v12  ;;  %v696_v50 = vsub.f32 %v1766_v5, %v1858_v25  ;;  %v720_v49 = vsub.f32 %v1829_v47, %v1858_v25  ;;  %v513_v0 = vpop.f32.mrf.mxu1  ;;  %v752_v61 = vsub.f32 %v1797_v41, %v1858_v25 }
 0x128   : > { %v1270_v18 = vpop.eup %1269  ;;  %1150 = vst [vmem:[%s1823_s7 + $0x88] sm:$0xff] %v869_v10  ;;  %v816_v28 = vmul.f32 0.6931472, %v1268_v16  ;;  %v657_v33 = vadd.f32 %v1629_v35, %v559_v11  ;;  %1277 = vpow2.f32 %v795_v4  ;;  %v784_v44 = vsub.f32 %v1849_v55, %v1858_v25 }
 0x129   : > { %1158 = vst [vmem:[%s1823_s7 + $0xc8] sm:$0xff] %v886_v17  ;;  %v806_v37 = vadd.f32 %v1270_v18, %v774_v19  ;;  %v709_v38 = vmul.f32 1.442695, %v696_v50  ;;  %v1272_v45 = vpop.eup %1271  ;;  %v733_v54 = vmul.f32 1.442695, %v720_v49  ;;  %v514_v1 = vadd.f32 %v513_v0, %v400_v27 }
 0x12a   : > { %v829_v46 = vadd.f32 %v816_v28, %v1722_v13  ;;  %v1891_v59 = vsel %vm604_vm6, -1e+09, %v657_v33  ;;  %v673_v53 = vmax.f32 %v1862_v48, %v1878_v15  ;;  %v765_v34 = vmul.f32 1.442695, %v752_v61 }
 0x12b   : > { %v1274_v2 = vpop.eup %1273  ;;  %1279 = vlog2.f32 %v806_v37  ;;  %v681_v57 = vmax.f32 %v1867_v8, %v1891_v59  ;;  %v641_v42 = vadd.f32 %v1621_v30, %v1614_v24  ;;  %vm605_vm7 = vcmp.ge.s32.totalorder %v1626_v32, %v597_v26 }
 0x12c   : > { %v837_v4 = vsub.f32 %v1702_v51, %v829_v46  ;;  %v853_v13 = vsub.f32 %v1695_v40, %v829_v46  ;;  %v870_v7 = vsub.f32 %v1706_v43, %v829_v46  ;;  %v448_v31 = vpop.f32.mrf.mxu2  ;;  %v887_v52 = vsub.f32 %v1710_v62, %v829_v46  ;;  %v1276_v17 = vpop.eup %1275 }
 0x12d   : > { %v743_v10 = vadd.f32 %v1274_v2, %v1272_v45  ;;  %1281 = vpow2.f32 %v709_v38  ;;  %v1901_v58 = vmax.f32 %v673_v53, %v681_v57  ;;  %v561_v3 = vpop.f32.mrf.mxu3  ;;  %v797_v51 = vmul.f32 1.442695, %v784_v44 }
 0x12e   : > { %845 = vst [vmem:[%s1823_s7 + $0x10] sm:$0xff] %v837_v4  ;;  %1283 = vpow2.f32 %v733_v54  ;;  %v624_v40 = vadd.f32 %v1619_v29, %v514_v1  ;;  %v562_v43 = vadd.f32 %v561_v3, %v448_v31  ;;  %v1278_v12 = vpop.eup %1277  ;;  %v1926_v61 = vadd.f32 %v1631_v36, %v1612_v21 }
 0x12f   : > { %1143 = vst [vmem:[%s1823_s7 + $0x50] sm:$0xff] %v853_v13  ;;  %v775_v62 = vadd.f32 %v1276_v17, %v743_v10  ;;  %v697_v11 = vsub.f32 %v1862_v48, %v1901_v58  ;;  %v721_v16 = vsub.f32 %v1878_v15, %v1901_v58  ;;  %1285 = vpow2.f32 %v765_v34 }
 0x130   : > { %1151 = vst [vmem:[%s1823_s7 + $0x90] sm:$0xff] %v870_v7  ;;  %v753_v29 = vsub.f32 %v1867_v8, %v1901_v58  ;;  %v658_v19 = vadd.f32 %v1629_v35, %v562_v43  ;;  %1287 = vpow2.f32 %v797_v51  ;;  %v785_v0 = vsub.f32 %v1891_v59, %v1901_v58 }
 0x131   : > { %v1280_v50 = vpop.eup %1279  ;;  %1159 = vst [vmem:[%s1823_s7 + $0xd0] sm:$0xff] %v887_v52  ;;  %v807_v24 = vadd.f32 %v1278_v12, %v775_v62  ;;  %v711_v30 = vmul.f32 1.442695, %v697_v11  ;;  %v735_v49 = vmul.f32 1.442695, %v721_v16 }
 0x132   : > { %v818_v27 = vmul.f32 0.6931472, %v1280_v50  ;;  %v1922_v18 = vsel %vm605_vm7, -1e+09, %v624_v40  ;;  %v1930_v35 = vsel %vm605_vm7, -1e+09, %v641_v42 }
 0x133   : > { %v1282_v28 = vpop.eup %1281  ;;  %1289 = vlog2.f32 %v807_v24  ;;  %v1934_v33 = vsel %vm605_vm7, -1e+09, %v658_v19  ;;  %v767_v44 = vmul.f32 1.442695, %v753_v29  ;;  %v674_v36 = vmax.f32 %v1926_v61, %v1922_v18 }
 0x134   : > { %v1284_v37 = vpop.eup %1283  ;;  %v830_v38 = vadd.f32 %v818_v27, %v1771_v63  ;;  %1291 = vpow2.f32 %v711_v30  ;;  %v682_v45 = vmax.f32 %v1930_v35, %v1934_v33  ;;  %v799_v1 = vmul.f32 1.442695, %v785_v0 }
 0x135   : > { %v744_v21 = vadd.f32 %v1284_v37, %v1282_v28  ;;  %1293 = vpow2.f32 %v735_v49  ;;  %v1286_v46 = vpop.eup %1285 }
 0x136   : > { %v838_v32 = vsub.f32 %v1726_v20, %v830_v38  ;;  %v854_v54 = vsub.f32 %v1730_v22, %v830_v38  ;;  %v871_v63 = vsub.f32 %v1743_v39, %v830_v38  ;;  %v888_v2 = vsub.f32 %v1751_v56, %v830_v38  ;;  %v1288_v4 = vpop.eup %1287 }
 0x137   : > { %v776_v53 = vadd.f32 %v1286_v46, %v744_v21  ;;  %v1945_v57 = vmax.f32 %v674_v36, %v682_v45  ;;  %1295 = vpow2.f32 %v767_v44 }
 0x138   : > { %846 = vst [vmem:[%s1823_s7 + $0x18] sm:$0xff] %v838_v32  ;;  %1297 = vpow2.f32 %v799_v1  ;;  %v1018_v1 = vld [vmem:[%s1823_s7 + $0x40] sm:$0xff] (%p1393_p4) }
 0x139   : > { %v1290_v13 = vpop.eup %1289  ;;  %1144 = vst [vmem:[%s1823_s7 + $0x58] sm:$0xff] %v854_v54  ;;  %v808_v7 = vadd.f32 %v1288_v4, %v776_v53  ;;  %v698_v20 = vsub.f32 %v1926_v61, %v1945_v57  ;;  %v722_v22 = vsub.f32 %v1922_v18, %v1945_v57  ;;  %v754_v39 = vsub.f32 %v1930_v35, %v1945_v57  ;;  %v1022_v53 = vld [vmem:[%s1823_s7 + $0x50] sm:$0xff] (%p1393_p4) }
 0x13a   : > { %v1292_v56 = vpop.eup %1291  ;;  %1152 = vst [vmem:[%s1823_s7 + $0x98] sm:$0xff] %v871_v63  ;;  %v820_v34 = vmul.f32 0.6931472, %v1290_v13  ;;  %v786_v17 = vsub.f32 %v1934_v33, %v1945_v57 }
 0x13b   : > { %v1294_v31 = vpop.eup %1293  ;;  %1160 = vst [vmem:[%s1823_s7 + $0xd8] sm:$0xff] %v888_v2  ;;  %1299 = vlog2.f32 %v808_v7  ;;  %v713_v26 = vmul.f32 1.442695, %v698_v20  ;;  %v737_v52 = vmul.f32 1.442695, %v722_v22  ;;  %v1020_v2 = vld [vmem:[%s1823_s7 + $0x48] sm:$0xff] (%p1393_p4) }
 0x13c   : > { %v831_v10 = vadd.f32 %v820_v34, %v1818_v23  ;;  %v745_v3 = vadd.f32 %v1294_v31, %v1292_v56  ;;  %v769_v51 = vmul.f32 1.442695, %v754_v39  ;;  %v801_v16 = vmul.f32 1.442695, %v786_v17  ;;  %1019 = vst [vmem:[%s2003_s11 + $0x80] sm:$0xff] (%p1393_p4), %v1018_v1  ;;  %v1034_v22 = vld [vmem:[%s1823_s7 + $0x80] sm:$0xff] (%p1393_p4) }
 0x13d   : > { %v1296_v40 = vpop.eup %1295  ;;  %1301 = vpow2.f32 %v713_v26  ;;  %1021 = vst [vmem:[%s2003_s11 + $0x88] sm:$0xff] (%p1393_p4), %v1020_v2  ;;  %v1036_v39 = vld [vmem:[%s1823_s7 + $0x88] sm:$0xff] (%p1393_p4)  ;;  %v1038_v56 = vld [vmem:[%s1823_s7 + $0x90] sm:$0xff] (%p1393_p4) }
 0x13e   : > { %v839_v43 = vsub.f32 %v1760_v6, %v831_v10  ;;  %v855_v12 = vsub.f32 %v1781_v9, %v831_v10  ;;  %v872_v42 = vsub.f32 %v1776_v14, %v831_v10  ;;  %v889_v62 = vsub.f32 %v1805_v60, %v831_v10  ;;  %v1298_v23 = vpop.eup %1297  ;;  %1023 = vst [vmem:[%s2003_s11 + $0x90] sm:$0xff] (%p1393_p4), %v1022_v53  ;;  %v1052_v17 = vld [vmem:[%s1823_s7 + $0xc8] sm:$0xff] (%p1393_p4) }
 0x13f   : > { %v777_v11 = vadd.f32 %v1296_v40, %v745_v3  ;;  %1303 = vpow2.f32 %v737_v52  ;;  %1035 = vst [vmem:[%s2003_s11 + $0x100] sm:$0xff] (%p1393_p4), %v1034_v22  ;;  %v1050_v3 = vld [vmem:[%s1823_s7 + $0xc0] sm:$0xff] (%p1393_p4) }
 0x140   : > { %847 = vst [vmem:[%s1823_s7 + $0x20] sm:$0xff] %v839_v43  ;;  %1305 = vpow2.f32 %v769_v51  ;;  %v1054_v51 = vld [vmem:[%s1823_s7 + $0xd0] sm:$0xff] (%p1393_p4) }
 0x141   : > { %v1300_v29 = vpop.eup %1299  ;;  %1145 = vst [vmem:[%s1823_s7 + $0x60] sm:$0xff] %v855_v12  ;;  %v809_v19 = vadd.f32 %v1298_v23, %v777_v11  ;;  %v1040_v34 = vld [vmem:[%s1823_s7 + $0x98] sm:$0xff] (%p1393_p4) }
 0x142   : > { %1153 = vst [vmem:[%s1823_s7 + $0xa0] sm:$0xff] %v872_v42  ;;  %v822_v50 = vmul.f32 0.6931472, %v1300_v29  ;;  %v1056_v40 = vld [vmem:[%s1823_s7 + $0xd8] sm:$0xff] (%p1393_p4) }
 0x143   : > { %1161 = vst [vmem:[%s1823_s7 + $0xe0] sm:$0xff] %v889_v62  ;;  %1307 = vlog2.f32 %v809_v19  ;;  %v1302_v6 = vpop.eup %1301 }
 0x144   : > { %v832_v14 = vadd.f32 %v822_v50, %v1858_v25  ;;  %1309 = vpow2.f32 %v801_v16  ;;  %1037 = vst [vmem:[%s2003_s11 + $0x108] sm:$0xff] (%p1393_p4), %v1036_v39 }
 0x145   : > { %v1304_v9 = vpop.eup %1303  ;;  %1039 = vst [vmem:[%s2003_s11 + $0x110] sm:$0xff] (%p1393_p4), %v1038_v56 }
 0x146   : > { %v840_v60 = vsub.f32 %v1766_v5, %v832_v14  ;;  %v856_v24 = vsub.f32 %v1829_v47, %v832_v14  ;;  %v873_v30 = vsub.f32 %v1797_v41, %v832_v14  ;;  %v890_v49 = vsub.f32 %v1849_v55, %v832_v14  ;;  %v1306_v0 = vpop.eup %1305  ;;  %1041 = vst [vmem:[%s2003_s11 + $0x118] sm:$0xff] (%p1393_p4), %v1040_v34 }
 0x147   : > { %v746_v27 = vadd.f32 %v1304_v9, %v1302_v6  ;;  %1051 = vst [vmem:[%s2003_s11 + $0x180] sm:$0xff] (%p1393_p4), %v1050_v3 }
 0x148   : > { %848 = vst [vmem:[%s1823_s7 + $0x28] sm:$0xff] %v840_v60  ;;  %v1026_v4 = vld [vmem:[%s1823_s7 + $0x60] sm:$0xff] (%p1393_p4) }
 0x149   : > { %v1308_v28 = vpop.eup %1307  ;;  %1146 = vst [vmem:[%s1823_s7 + $0x68] sm:$0xff] %v856_v24  ;;  %v778_v25 = vadd.f32 %v1306_v0, %v746_v27  ;;  %v1042_v31 = vld [vmem:[%s1823_s7 + $0xa0] sm:$0xff] (%p1393_p4) }
 0x14a   : > { %v1310_v37 = vpop.eup %1309  ;;  %1154 = vst [vmem:[%s1823_s7 + $0xa8] sm:$0xff] %v873_v30  ;;  %v824_v38 = vmul.f32 0.6931472, %v1308_v28  ;;  %v1058_v43 = vld [vmem:[%s1823_s7 + $0xe0] sm:$0xff] (%p1393_p4) }
 0x14b   : > { %1162 = vst [vmem:[%s1823_s7 + $0xe8] sm:$0xff] %v890_v49  ;;  %v810_v5 = vadd.f32 %v1310_v37, %v778_v25 }
 0x14c   : > { %v833_v47 = vadd.f32 %v824_v38, %v1901_v58  ;;  %1027 = vst [vmem:[%s2003_s11 + $0xa0] sm:$0xff] (%p1393_p4), %v1026_v4 }
 0x14d   : > { %1311 = vlog2.f32 %v810_v5  ;;  %1043 = vst [vmem:[%s2003_s11 + $0x120] sm:$0xff] (%p1393_p4), %v1042_v31 }
 0x14e   : > { %v841_v41 = vsub.f32 %v1862_v48, %v833_v47  ;;  %v857_v55 = vsub.f32 %v1878_v15, %v833_v47  ;;  %v874_v44 = vsub.f32 %v1867_v8, %v833_v47  ;;  %v891_v45 = vsub.f32 %v1891_v59, %v833_v47  ;;  %v1002_v8 = vld [vmem:[%s1823_s7] sm:$0xff] (%p1393_p4)  ;;  %v1004_v59 = vld [vmem:[%s1823_s7 + $0x8] sm:$0xff] (%p1393_p4)  ;;  %1053 = vst [vmem:[%s2003_s11 + $0x188] sm:$0xff] (%p1393_p4), %v1052_v17 }
 0x14f   : > { %1003 = vst [vmem:[%s2003_s11] sm:$0xff] (%p1393_p4), %v1002_v8 }
 0x150   : > { %849 = vst [vmem:[%s1823_s7 + $0x30] sm:$0xff] %v841_v41  ;;  %v1028_v13 = vld [vmem:[%s1823_s7 + $0x68] sm:$0xff] (%p1393_p4) }
 0x151   : > { %1147 = vst [vmem:[%s1823_s7 + $0x70] sm:$0xff] %v857_v55  ;;  %v1044_v26 = vld [vmem:[%s1823_s7 + $0xa8] sm:$0xff] (%p1393_p4) }
 0x152   : > { %1155 = vst [vmem:[%s1823_s7 + $0xb0] sm:$0xff] %v874_v44  ;;  %v1060_v12 = vld [vmem:[%s1823_s7 + $0xe8] sm:$0xff] (%p1393_p4) }
 0x153   : > { %v1312_v21 = vpop.eup %1311  ;;  %1163 = vst [vmem:[%s1823_s7 + $0xf0] sm:$0xff] %v891_v45 }
 0x154   : > { %v826_v36 = vmul.f32 0.6931472, %v1312_v21  ;;  %1005 = vst [vmem:[%s2003_s11 + $0x8] sm:$0xff] (%p1393_p4), %v1004_v59 }
 0x155   : > { %1029 = vst [vmem:[%s2003_s11 + $0xa8] sm:$0xff] (%p1393_p4), %v1028_v13 }
 0x156   : > { %v834_v58 = vadd.f32 %v826_v36, %v1945_v57  ;;  %v1024_v57 = vld [vmem:[%s1823_s7 + $0x58] sm:$0xff] (%p1393_p4)  ;;  %1045 = vst [vmem:[%s2003_s11 + $0x128] sm:$0xff] (%p1393_p4), %v1044_v26 }
 0x157   : > { %v1014_v54 = vld [vmem:[%s1823_s7 + $0x30] sm:$0xff] (%p1393_p4)  ;;  %1025 = vst [vmem:[%s2003_s11 + $0x98] sm:$0xff] (%p1393_p4), %v1024_v57 }
 0x158   : > { %v842_v46 = vsub.f32 %v1926_v61, %v834_v58  ;;  %v858_v48 = vsub.f32 %v1922_v18, %v834_v58  ;;  %v875_v15 = vsub.f32 %v1930_v35, %v834_v58  ;;  %v892_v32 = vsub.f32 %v1934_v33, %v834_v58  ;;  %v1006_v18 = vld [vmem:[%s1823_s7 + $0x10] sm:$0xff] (%p1393_p4)  ;;  %v1008_v61 = vld [vmem:[%s1823_s7 + $0x18] sm:$0xff] (%p1393_p4)  ;;  %v1010_v35 = vld [vmem:[%s1823_s7 + $0x20] sm:$0xff] (%p1393_p4)  ;;  %1015 = vst [vmem:[%s2003_s11 + $0x30] sm:$0xff] (%p1393_p4), %v1014_v54 }
 0x159   : > { %908 = sbr.rel (!%p1393_p4) target bundleno = 364 (0x16c), region = 44  ;;  %1007 = vst [vmem:[%s2003_s11 + $0x10] sm:$0xff] (%p1393_p4), %v1006_v18  ;;  %v1012_v33 = vld [vmem:[%s1823_s7 + $0x28] sm:$0xff] (%p1393_p4)  ;;  %v1030_v7 = vld [vmem:[%s1823_s7 + $0x70] sm:$0xff] (%p1393_p4) }
 0x15a   : > { %850 = vst [vmem:[%s1823_s7 + $0x38] sm:$0xff] %v842_v46  ;;  %v1046_v52 = vld [vmem:[%s1823_s7 + $0xb0] sm:$0xff] (%p1393_p4) }
 0x15b   : > { %1148 = vst [vmem:[%s1823_s7 + $0x78] sm:$0xff] %v858_v48  ;;  %v1062_v42 = vld [vmem:[%s1823_s7 + $0xf0] sm:$0xff] (%p1393_p4) }
 0x15c   : > { %1156 = vst [vmem:[%s1823_s7 + $0xb8] sm:$0xff] %v875_v15 }
 0x15d   : > { %1164 = vst [vmem:[%s1823_s7 + $0xf8] sm:$0xff] %v892_v32 }
 0x15e   : > { %1009 = vst [vmem:[%s2003_s11 + $0x18] sm:$0xff] %v1008_v61 }
 0x15f   : > { %1011 = vst [vmem:[%s2003_s11 + $0x20] sm:$0xff] %v1010_v35 }
 0x160   : > { %1013 = vst [vmem:[%s2003_s11 + $0x28] sm:$0xff] %v1012_v33 }
 0x161   : > { %v1016_v63 = vld [vmem:[%s1823_s7 + $0x38] sm:$0xff]  ;;  %1031 = vst [vmem:[%s2003_s11 + $0xb0] sm:$0xff] %v1030_v7 }
 0x162   : > { %1017 = vst [vmem:[%s2003_s11 + $0x38] sm:$0xff] %v1016_v63  ;;  %v1032_v20 = vld [vmem:[%s1823_s7 + $0x78] sm:$0xff] }
 0x163   : > { %1033 = vst [vmem:[%s2003_s11 + $0xb8] sm:$0xff] %v1032_v20  ;;  %v1048_v10 = vld [vmem:[%s1823_s7 + $0xb8] sm:$0xff] }
 0x164   : > { %1047 = vst [vmem:[%s2003_s11 + $0x130] sm:$0xff] %v1046_v52  ;;  %v1064_v62 = vld [vmem:[%s1823_s7 + $0xf8] sm:$0xff] }
 0x165   : > { %1049 = vst [vmem:[%s2003_s11 + $0x138] sm:$0xff] %v1048_v10 }
 0x166   : > { %1055 = vst [vmem:[%s2003_s11 + $0x190] sm:$0xff] %v1054_v51 }
 0x167   : > { %1057 = vst [vmem:[%s2003_s11 + $0x198] sm:$0xff] %v1056_v40 }
 0x168   : > { %1059 = vst [vmem:[%s2003_s11 + $0x1a0] sm:$0xff] %v1058_v43 }
 0x169   : > { %1061 = vst [vmem:[%s2003_s11 + $0x1a8] sm:$0xff] %v1060_v12 }
 0x16a   : > { %1063 = vst [vmem:[%s2003_s11 + $0x1b0] sm:$0xff] %v1062_v42 }
 0x16b   : > { %1065 = vst [vmem:[%s2003_s11 + $0x1b8] sm:$0xff] %v1064_v62 }
 0x16c PF: > { %p12_p9 = scmp.ge.s32.totalorder %s1383_s22, 4   ;;  %s2085_s18 = smov %s1331_s19 }
 0x16d   : > { %s2086_s19 = smov %s1391_s25  ;;  %s2087_s20 = smov %s1383_s22 }
 0x16e   :  { %14 = sbr.rel (!%p12_p9) target bundleno = 2 (0x2), region = 114 }

</bundles_post_ra>
